<compile_context>
chip_gen: v5e
topology: v5e:2x2
jax: 0.10.0
libtpu: 0.0.40
codegen_flags: <defaults>
</compile_context>

<pallas_src>
import jax
import jax.numpy as jnp
import numpy as np
from jax.experimental import pallas as pl
from jax.experimental.pallas import tpu as pltpu


def cbam_kernel(x_ref,    # VMEM (1, C, HW)   current batch element
                w1t_ref,  # VMEM (C, CR)      fc1 weight, transposed
                b1_ref,   # VMEM (1, CR)      fc1 bias
                w2_ref,   # VMEM (C, CR)      fc2 weight
                b2_ref,   # VMEM (C, 1)       fc2 bias
                m_ref,    # VMEM (2*HW, HW)   7x7 conv as dense matrix (+ border zeros)
                o_ref):   # VMEM (1, C, HW)
    x = x_ref[0].astype(jnp.float32)                                   # (C, HW)

    # ---------------- CAM: channel attention ----------------
    pooled = jnp.mean(x, axis=-1, keepdims=True)                       # (C, 1) global avg pool
    h1 = jnp.sum(w1t_ref[...] * pooled, axis=0, keepdims=True) + b1_ref[...]   # (1, CR)
    h1 = jnp.maximum(h1, 0.0)                                          # ReLU
    logits = jnp.sum(w2_ref[...] * h1, axis=1, keepdims=True) + b2_ref[...]    # (C, 1)
    cam = x * jax.nn.sigmoid(logits)                                   # (C, HW)

    # ---------------- SAM: spatial attention ----------------
    mx = jnp.max(cam, axis=0, keepdims=True)                           # (1, HW) channel max
    av = jnp.mean(cam, axis=0, keepdims=True)                          # (1, HW) channel mean
    xcat = jnp.concatenate([mx, av], axis=1)                           # (1, 2*HW) lane concat
    # 7x7 "same" conv over [max ; avg] == one MXU matmul against the constant matrix.
    conv = jnp.dot(xcat, m_ref[...], preferred_element_type=jnp.float32)  # (1, HW)

    o_ref[0] = (cam * conv).astype(o_ref.dtype)                        # broadcast over channels


def _conv7x7_as_matrix(wc, h, w):
    """Dense (2*H*W, H*W) matrix implementing Conv2d(2->1, k=7, padding=3, bias=False).

    Row ic*H*W + (iy*W + ix), column (oy*W + ox) holds the kernel weight linking
    input pixel (ic, iy, ix) to output pixel (oy, ox); zero-padding is baked in
    as zero rows/entries.  Built with numpy on concrete weights (call outside jit).
    """
    wc_np = np.asarray(wc, dtype=np.float32)          # (1, 2, K, K), OIHW
    _, cin, k, _ = wc_np.shape
    pad = (k - 1) // 2
    hw = h * w
    m = np.zeros((cin * hw, hw), dtype=np.float32)
    oy, ox = np.meshgrid(np.arange(h), np.arange(w), indexing="ij")
    o_idx = (oy * w + ox).ravel()
    for dy in range(k):
        iy = oy + dy - pad
        for dx in range(k):
            ix = ox + dx - pad
            valid = ((iy >= 0) & (iy < h) & (ix >= 0) & (ix < w)).ravel()
            i_idx = (np.clip(iy, 0, h - 1) * w + np.clip(ix, 0, w - 1)).ravel()
            for ic in range(cin):
                m[ic * hw + i_idx[valid], o_idx[valid]] += wc_np[0, ic, dy, dx]
    return jnp.asarray(m)


def cbam_pallas(x, w1, b1, w2, b2, wc):
    """CBAM forward. x: (B, C, H, W); fc weights in torch layout (out_features, in_features)."""
    b_, c_, h_, w_ = x.shape
    hw = h_ * w_
    cr = w1.shape[0]

    x3 = x.reshape(b_, c_, hw)
    w1t = jnp.asarray(w1, jnp.float32).T                      # (C, CR)
    b1r = jnp.asarray(b1, jnp.float32).reshape(1, cr)         # (1, CR)
    w2m = jnp.asarray(w2, jnp.float32)                        # (C, CR)
    b2c = jnp.asarray(b2, jnp.float32).reshape(c_, 1)         # (C, 1)
    mbig = _conv7x7_as_matrix(wc, h_, w_)                     # (2*HW, HW) constant

    out3 = pl.pallas_call(
        cbam_kernel,
        out_shape=jax.ShapeDtypeStruct((b_, c_, hw), x.dtype),
        grid=(b_,),
        in_specs=[
            pl.BlockSpec((1, c_, hw), lambda b: (b, 0, 0)),   # per-batch activation block
            pl.BlockSpec((c_, cr), lambda b: (0, 0)),         # grid-invariant params below
            pl.BlockSpec((1, cr), lambda b: (0, 0)),
            pl.BlockSpec((c_, cr), lambda b: (0, 0)),
            pl.BlockSpec((c_, 1), lambda b: (0, 0)),
            pl.BlockSpec((2 * hw, hw), lambda b: (0, 0)),
        ],
        out_specs=pl.BlockSpec((1, c_, hw), lambda b: (b, 0, 0)),
        compiler_params=pltpu.CompilerParams(
            dimension_semantics=("parallel",)),
    )(x3, w1t, b1r, w2m, b2c, mbig)
    return out3.reshape(b_, c_, h_, w_)


def cbam_reference_np(x, w1, b1, w2, b2, wc):
    """Pure numpy float64 reference matching the torch Cbam forward (quantize=False)."""
    x = np.asarray(x, np.float64)
    w1 = np.asarray(w1, np.float64)
    b1 = np.asarray(b1, np.float64)
    w2 = np.asarray(w2, np.float64)
    b2 = np.asarray(b2, np.float64)
    wc = np.asarray(wc, np.float64)
    b, c, h, w = x.shape
    # CAM
    y = x.mean(axis=(2, 3))                                   # (B, C)
    y = np.maximum(y @ w1.T + b1, 0.0)
    y = y @ w2.T + b2
    s = 1.0 / (1.0 + np.exp(-y))
    cam = x * s[:, :, None, None]
    # SAM
    mx = cam.max(axis=1, keepdims=True)
    av = cam.mean(axis=1, keepdims=True)
    cat = np.concatenate([mx, av], axis=1)                    # (B, 2, H, W)
    k = wc.shape[-1]
    pad = (k - 1) // 2
    catp = np.pad(cat, ((0, 0), (0, 0), (pad, pad), (pad, pad)))
    conv = np.zeros((b, 1, h, w), np.float64)
    for dy in range(k):
        for dx in range(k):
            conv[:, 0] += (catp[:, 0, dy:dy + h, dx:dx + w] * wc[0, 0, dy, dx]
                           + catp[:, 1, dy:dy + h, dx:dx + w] * wc[0, 1, dy, dx])
    return conv * cam


if __name__ == "__main__":
    # Small shapes consistent with the module: channels=4, r=2, 16x16 spatial, batch=2.
    B, C, H, W, R = 2, 4, 16, 16, 2
    CR = C // R
    K = 7

    key = jax.random.PRNGKey(0)
    kx, k1, kb1, k2, kb2, kc = jax.random.split(key, 6)

    x = jax.random.normal(kx, (B, C, H, W), dtype=jnp.float32)
    # CAM params: fc1 (C -> C//r), fc2 (C//r -> C), both with bias (torch Linear layout)
    w1 = jax.random.normal(k1, (CR, C), dtype=jnp.float32) * 0.3
    b1 = jax.random.normal(kb1, (CR,), dtype=jnp.float32) * 0.1
    w2 = jax.random.normal(k2, (C, CR), dtype=jnp.float32) * 0.3
    b2 = jax.random.normal(kb2, (C,), dtype=jnp.float32) * 0.1
    # SAM params: Conv2d(2 -> 1, k=7, pad=3, bias=False), OIHW
    wc = jax.random.normal(kc, (1, 2, K, K), dtype=jnp.float32) * 0.1

    out = jax.block_until_ready(cbam_pallas(x, w1, b1, w2, b2, wc))
    ref = cbam_reference_np(x, w1, b1, w2, b2, wc)
    # Loose-ish tolerance: covers possible bf16-pass rounding of the MXU f32 matmul
    # while still catching any indexing / weight-orientation bug (which would be O(1)).
    np.testing.assert_allclose(np.asarray(out, np.float64), ref, rtol=2e-2, atol=1e-2)
    print("KERNEL_OK")
</pallas_src>

<mosaic_0001>
module attributes {stable_mosaic.version = 11 : i64} {
  func.func @cbam_kernel(%arg0: i32, %arg1: memref<1x4x256xf32, #tpu.memory_space<vmem>>, %arg2: memref<4x2xf32, #tpu.memory_space<vmem>>, %arg3: memref<1x2xf32, #tpu.memory_space<vmem>>, %arg4: memref<4x2xf32, #tpu.memory_space<vmem>>, %arg5: memref<4x1xf32, #tpu.memory_space<vmem>>, %arg6: memref<512x256xf32, #tpu.memory_space<vmem>>, %arg7: memref<1x4x256xf32, #tpu.memory_space<vmem>>) attributes {dimension_semantics = [#tpu.dimension_semantics<parallel>], iteration_bounds = array<i64: 2>, scalar_prefetch = 0 : i64, scratch_operands = 0 : i64, tpu.core_type = #tpu.core_type<tc>, window_params = [{transform_indices = @transform_0, window_bounds = array<i64: 1, 4, 256>}, {pipeline_mode = #tpu.pipeline_mode<synchronous>, transform_indices = @transform_1, window_bounds = array<i64: 4, 2>}, {pipeline_mode = #tpu.pipeline_mode<synchronous>, transform_indices = @transform_2, window_bounds = array<i64: 1, 2>}, {pipeline_mode = #tpu.pipeline_mode<synchronous>, transform_indices = @transform_3, window_bounds = array<i64: 4, 2>}, {pipeline_mode = #tpu.pipeline_mode<synchronous>, transform_indices = @transform_4, window_bounds = array<i64: 4, 1>}, {pipeline_mode = #tpu.pipeline_mode<synchronous>, transform_indices = @transform_5, window_bounds = array<i64: 512, 256>}, {transform_indices = @transform_6, window_bounds = array<i64: 1, 4, 256>}]} {
    %c0 = arith.constant 0 : index
    %c0_0 = arith.constant 0 : index
    %c0_1 = arith.constant 0 : index
    %0 = vector.load %arg1[%c0, %c0_0, %c0_1] : memref<1x4x256xf32, #tpu.memory_space<vmem>>, vector<1x4x256xf32>
    %1 = vector.shape_cast %0 : vector<1x4x256xf32> to vector<4x256xf32>
    %cst = arith.constant dense<0.000000e+00> : vector<4xf32>
    %2 = vector.multi_reduction <add>, %1, %cst [1] : vector<4x256xf32> to vector<4xf32>
    %3 = vector.shape_cast %2 : vector<4xf32> to vector<4x1xf32>
    %cst_2 = arith.constant 2.560000e+02 : f32
    %4 = vector.broadcast %cst_2 : f32 to vector<4x1xf32>
    %5 = arith.divf %3, %4 : vector<4x1xf32>
    %c0_3 = arith.constant 0 : index
    %c0_4 = arith.constant 0 : index
    %6 = vector.load %arg2[%c0_3, %c0_4] : memref<4x2xf32, #tpu.memory_space<vmem>>, vector<4x2xf32>
    %7 = vector.broadcast %5 : vector<4x1xf32> to vector<4x2xf32>
    %8 = arith.mulf %6, %7 : vector<4x2xf32>
    %cst_5 = arith.constant dense<0.000000e+00> : vector<2xf32>
    %9 = vector.multi_reduction <add>, %8, %cst_5 [0] : vector<4x2xf32> to vector<2xf32>
    %10 = vector.shape_cast %9 : vector<2xf32> to vector<1x2xf32>
    %c0_6 = arith.constant 0 : index
    %c0_7 = arith.constant 0 : index
    %11 = vector.load %arg3[%c0_6, %c0_7] : memref<1x2xf32, #tpu.memory_space<vmem>>, vector<1x2xf32>
    %12 = arith.addf %10, %11 : vector<1x2xf32>
    %cst_8 = arith.constant 0.000000e+00 : f32
    %13 = vector.broadcast %cst_8 : f32 to vector<1x2xf32>
    %14 = arith.maximumf %12, %13 : vector<1x2xf32>
    %c0_9 = arith.constant 0 : index
    %c0_10 = arith.constant 0 : index
    %15 = vector.load %arg4[%c0_9, %c0_10] : memref<4x2xf32, #tpu.memory_space<vmem>>, vector<4x2xf32>
    %16 = vector.broadcast %14 : vector<1x2xf32> to vector<4x2xf32>
    %17 = arith.mulf %15, %16 : vector<4x2xf32>
    %cst_11 = arith.constant dense<0.000000e+00> : vector<4xf32>
    %18 = vector.multi_reduction <add>, %17, %cst_11 [1] : vector<4x2xf32> to vector<4xf32>
    %19 = vector.shape_cast %18 : vector<4xf32> to vector<4x1xf32>
    %c0_12 = arith.constant 0 : index
    %c0_13 = arith.constant 0 : index
    %20 = vector.load %arg5[%c0_12, %c0_13] : memref<4x1xf32, #tpu.memory_space<vmem>>, vector<4x1xf32>
    %21 = arith.addf %19, %20 : vector<4x1xf32>
    %22 = arith.negf %21 : vector<4x1xf32>
    %23 = math.exp %22 : vector<4x1xf32>
    %cst_14 = arith.constant 1.000000e+00 : f32
    %24 = vector.broadcast %cst_14 : f32 to vector<4x1xf32>
    %25 = arith.addf %24, %23 : vector<4x1xf32>
    %26 = arith.divf %24, %25 : vector<4x1xf32>
    %27 = vector.broadcast %26 : vector<4x1xf32> to vector<4x256xf32>
    %28 = arith.mulf %1, %27 : vector<4x256xf32>
    %cst_15 = arith.constant dense<0xFF800000> : vector<256xf32>
    %29 = vector.multi_reduction <maximumf>, %28, %cst_15 [0] : vector<4x256xf32> to vector<256xf32>
    %30 = vector.shape_cast %29 : vector<256xf32> to vector<1x256xf32>
    %cst_16 = arith.constant dense<0.000000e+00> : vector<256xf32>
    %31 = vector.multi_reduction <add>, %28, %cst_16 [0] : vector<4x256xf32> to vector<256xf32>
    %32 = vector.shape_cast %31 : vector<256xf32> to vector<1x256xf32>
    %cst_17 = arith.constant 4.000000e+00 : f32
    %33 = vector.broadcast %cst_17 : f32 to vector<1x256xf32>
    %34 = arith.divf %32, %33 : vector<1x256xf32>
    %35 = tpu.concatenate %30, %34 in 1 : vector<1x256xf32>, vector<1x256xf32> -> vector<1x512xf32>
    %c0_18 = arith.constant 0 : index
    %c0_19 = arith.constant 0 : index
    %36 = vector.load %arg6[%c0_18, %c0_19] : memref<512x256xf32, #tpu.memory_space<vmem>>, vector<512x256xf32>
    %cst_20 = arith.constant dense<0.000000e+00> : vector<1x256xf32>
    %37 = tpu.matmul %35, %36, %cst_20 {dimension_numbers = #tpu.dot_dimension_numbers<[1], [0], [0], [1], [0, 0, 1, 1], [], []>} : vector<1x512xf32>, vector<512x256xf32>, vector<1x256xf32> -> vector<1x256xf32>
    %38 = vector.broadcast %37 : vector<1x256xf32> to vector<4x256xf32>
    %39 = arith.mulf %28, %38 : vector<4x256xf32>
    %c0_21 = arith.constant 0 : index
    %c0_22 = arith.constant 0 : index
    %c0_23 = arith.constant 0 : index
    %40 = vector.load %arg7[%c0_21, %c0_22, %c0_23] : memref<1x4x256xf32, #tpu.memory_space<vmem>>, vector<1x4x256xf32>
    %41 = vector.shape_cast %40 : vector<1x4x256xf32> to vector<4x256xf32>
    %42 = vector.shape_cast %39 : vector<4x256xf32> to vector<1x4x256xf32>
    tpu.vector_store %arg7[%c0_21, %c0_22, %c0_23], %42 {strides = array<i32>} : memref<1x4x256xf32, #tpu.memory_space<vmem>>, vector<1x4x256xf32>,
    return
  }
  func.func @transform_0(%arg0: i32) -> (i32, i32, i32) {
    %c0_i32 = arith.constant 0 : i32
    %c0_i32_0 = arith.constant 0 : i32
    %c0_i32_1 = arith.constant 0 : i32
    return %arg0, %c0_i32, %c0_i32_0 : i32, i32, i32
  }
  func.func @transform_1(%arg0: i32) -> (i32, i32) {
    %c0_i32 = arith.constant 0 : i32
    %c0_i32_0 = arith.constant 0 : i32
    %c0_i32_1 = arith.constant 0 : i32
    return %c0_i32, %c0_i32_0 : i32, i32
  }
  func.func @transform_2(%arg0: i32) -> (i32, i32) {
    %c0_i32 = arith.constant 0 : i32
    %c0_i32_0 = arith.constant 0 : i32
    %c0_i32_1 = arith.constant 0 : i32
    return %c0_i32, %c0_i32_0 : i32, i32
  }
  func.func @transform_3(%arg0: i32) -> (i32, i32) {
    %c0_i32 = arith.constant 0 : i32
    %c0_i32_0 = arith.constant 0 : i32
    %c0_i32_1 = arith.constant 0 : i32
    return %c0_i32, %c0_i32_0 : i32, i32
  }
  func.func @transform_4(%arg0: i32) -> (i32, i32) {
    %c0_i32 = arith.constant 0 : i32
    %c0_i32_0 = arith.constant 0 : i32
    %c0_i32_1 = arith.constant 0 : i32
    return %c0_i32, %c0_i32_0 : i32, i32
  }
  func.func @transform_5(%arg0: i32) -> (i32, i32) {
    %c0_i32 = arith.constant 0 : i32
    %c0_i32_0 = arith.constant 0 : i32
    %c0_i32_1 = arith.constant 0 : i32
    return %c0_i32, %c0_i32_0 : i32, i32
  }
  func.func @transform_6(%arg0: i32) -> (i32, i32, i32) {
    %c0_i32 = arith.constant 0 : i32
    %c0_i32_0 = arith.constant 0 : i32
    %c0_i32_1 = arith.constant 0 : i32
    return %arg0, %c0_i32, %c0_i32_0 : i32, i32, i32
  }
}

</mosaic_0001>

<bundles_post_ra>
// kernel: tpu_custom_call.1
= control target key start
LH: loop header
LB: loop body
LE: loop exit
PB: predicated region body
PF: predicated region fallthrough
CT: control target
= control target key end

     0   :  { %11 = vsyncpa [#allocation3], 0  ;;  %s1241_s0 = inlined_call_operand.hbm [shape: f32[2,4,256], index: 0, kind: input, shape index: {}]   ;;  %s1242_s1 = inlined_call_operand.vmem [shape: f32[4,2], index: 1, kind: input, shape index: {}]   ;;  %s1243_s2 = inlined_call_operand.vmem [shape: f32[1,2], index: 2, kind: input, shape index: {}]   ;;  %s1244_s3 = inlined_call_operand.vmem [shape: f32[4,2], index: 3, kind: input, shape index: {}]   ;;  %s1245_s4 = inlined_call_operand.vmem [shape: f32[4,1], index: 4, kind: input, shape index: {}]   ;;  %s1246_s5 = inlined_call_operand.hbm [shape: f32[512,256], index: 5, kind: input, shape index: {}]   ;;  %s1247_s6 = inlined_call_operand.hbm [shape: f32[2,4,256], index: 6, kind: output, shape index: {}]  }
   0x1   :  { %13 = vsyncpa [#allocation3 + $0x1], 0 }
   0x2   :  { %14 = vsyncpa [#allocation6], 0 }
   0x3   :  { %15 = vsyncpa [#allocation4], 0 }
   0x4   :  { %17 = vsyncpa [#allocation4 + $0x1], 0  ;;  %s1066_s21 = smov 0   ;;  %s1068_s22 = smov 0  }
   0x5   :  { %s1070_s23 = smov 0   ;;  %s1072_s24 = smov 0  }
   0x6 LB: > { %s208_s27 = sshll.u32 %s1246_s5, 4  ;;  %s1090_s28 = sadd.s32 4294967295, %s1022_s24   ;;  %s1022_s24 = sphi %s1072_s24, %s1257_s24   ;;  %s1018_s23 = sphi %s1070_s23, %s1256_s23   ;;  %s1014_s22 = sphi %s1068_s22, %s1255_s22   ;;  %s1010_s21 = sphi %s1066_s21, %s1254_s21   ;;  %s209_s27 = int_to_ptr.hbm [resolvable:$true] %s208_s27 }
   0x7   : > { %p801_p0 = scmp.ge.s32.totalorder %s1022_s24, 1  ;;  %p44_p1 = scmp.eq.s32.totalorder %s1090_s28, 0 }
   0x8   : > { %p185_p2 = scmp.lt.s32.totalorder %s1022_s24, 3  ;;  %s1024_s30 = smov [#allocation5]  }
   0x9   : > { %s210_s7 = sshll.u32 %s1024_s30, 4  ;;  %s1025_s8 = smov 256   ;;  %s211_s7 = int_to_ptr.vmem [resolvable:$true] %s210_s7 }
   0xa   : > { %p1095_p3 = pnand %p801_p0, %p185_p2  ;;  %s1026_s9 = smov 16  }
   0xb   : > { %s800_s10 = sadd.s32 4294967294, %s1022_s24   ;;  %s1106_s11 = sadd.s32 1, %s1022_s24  }
   0xc   : > { %p827_p4 = pneg %p1095_p3  ;;  %s30_s12 = sadd.s32 1, %s1018_s23 }
   0xd   : > { %s27_s13 = ssub.s32 %s1022_s24, %s1106_s11  ;;  %p37_p7 = scmp.ne.s32.totalorder %s1018_s23, %s1014_s22 }
   0xe   : > { %p828_p6 = pnand %p827_p4, %p44_p1  ;;  %p28_p8 = scmp.eq.s32.totalorder %s27_s13, 0 }
   0xf   : > { %p38_p9 = scmp.eq.s32.totalorder %s1022_s24, 0  ;;  %p43_p10 = scmp.ne.s32.totalorder %s1014_s22, %s1010_s21 }
  0x10   : > { %830 = dma.hbm_to_vmem [thread:$0]  (!%p828_p6), %s209_s27, 16384, %s211_s7, [#allocation6], %s1025_s8, %s1025_s8, %s1026_s9  }
  0x11   : > { %p172_p11 = scmp.eq.s32.totalorder %s1090_s28, 1  ;;  %p1122_p12 = por %p44_p1, %p43_p10 }
  0x12   : > { %s1118_s14 = scalar_select %p28_p8, %s1018_s23, %s30_s12  }
  0x13   : > { %p1126_p13 = por %p172_p11, %p37_p7  ;;  %p178_p0 = scmp.eq.s32.totalorder %s800_s10, 1 }
  0x14   : > { %p39_p2 = por %p38_p9, %p37_p7  ;;  %s224_s17 = sand.u32 1, %s1018_s23  }
  0x15   : > { %p1131_p4 = por %p178_p0, %p43_p10  ;;  %p840_p6 = scmp.lt.s32.totalorder %s1022_s24, 2 }
  0x16   : > { %s804_s19 = sshll.u32 %s224_s17, 3  ;;  %s817_s20 = sshll.u32 %s1022_s24, 3 }
  0x17   : > { %s233_s27 = scalar_lea.hbm %s1241_s0, %s817_s20  ;;  %s228_s7 = scalar_lea.vmem [#allocation2], %s804_s19 }
  0x18   : > { %s235_s30 = sshll.u32 %s233_s27, 4  ;;  %s237_s8 = sshll.u32 %s228_s7, 4  ;;  %s236_s30 = int_to_ptr.hbm [resolvable:$true] %s235_s30  ;;  %s238_s8 = int_to_ptr.vmem [resolvable:$true] %s237_s8 }
  0x19   : > { %p1140_p8 = pnand %p840_p6, %p39_p2  ;;  %s225_s10 = scalar_lea.sflag [#allocation3], %s224_s17 }
  0x1a   : > { %s922_s12 = sshra.s32 %s236_s30, 4  ;;  %s929_s19 = scalar_lea.hbm %s1241_s0, 16  ;;  %s923_s12 = int_to_ptr.hbm [resolvable:$true] %s922_s12 }
  0x1b   : > { %s924_s13 = scalar_lea.hbm %s923_s12, 8  ;;  %p926_p9 = pneg %p1140_p8 }
  0x1c   : > { %p925_p7 = scmp.ne.s32.totalorder %s923_s12, %s924_s13  ;;  %p930_p0 = scmp.lt.s32.totalorder %s923_s12, %s1241_s0 }
  0x1d   : > { %p931_p2 = scmp.lt.s32.totalorder %s929_s19, %s924_s13 }
  0x1e   : > { %p927_p10 = pnand %p926_p9, %p925_p7 }
  0x1f   : > { %p932_p6 = por %p931_p2, %p930_p0 }
  0x20   : > { %p928_p11 = pneg %p927_p10 }
  0x22   : > { %p933_p5 = pnand %p932_p6, %p928_p11 }
  0x24   : > { %936 = shalt.err (!%p933_p5)
}
  0x25   : > { %834 = dma.hbm_to_vmem [thread:$0]  (!%p1140_p8), %s236_s30, 128, %s238_s8, %s225_s10  }
  0x26   : > { %246 = sbr.rel (%p1095_p3) target bundleno = 650 (0x28a), region = 44  ;;  %s1157_s17 = sand.u32 (!%p1095_p3), 1, %s1014_s22  }
  0x27   : > { %s808_s7 = sshll.u32 (!%p1095_p3), %s1157_s17, 3  ;;  %s249_s20 = scalar_lea.sflag (!%p1095_p3), [#allocation3], %s1157_s17 }
  0x28   : > { %s252_s12 = scalar_lea.vmem (!%p1095_p3), [#allocation2], %s808_s7 }
  0x2b   : > { %997 = dma.done.wait (%p1122_p12), %s249_s20, 128  }
  0x2c   : > { %999 = vsyncadd (%p1122_p12), %s249_s20, 4294967168 }
  0x2d   : > { %1001 = dma.done.wait (%p44_p1), [#allocation6], 16384  }
  0x2e   : > { %1003 = vsyncadd (%p44_p1), [#allocation6], 4294950912  ;;  %v1171_v0 = vld [vmem:[%s252_s12] sm:$0xff]  ;;  %vm294_vm0 = vcmask 1043456   ;;  %v1027_v6 = vmov 256.0   ;;  %vm310_vm2 = vcmask 11264  }
  0x2f   : > { %289 = vst [vmem:[#allocation1] ss:$2 sm:$0xff] %v1171_v0  ;;  %884 = vrcp.f32 %v1027_v6  ;;  %v308_v13 = vld [vmem:[%s1242_s1] sm:$0xf]  ;;  %v1028_v31 = vmov 0   ;;  %v436_v33 = vld [vmem:[#allocation5 + $0xf0] sm:$0xff] }
  0x30   : > { %v318_v23 = vld [vmem:[%s1243_s2] sm:$0x1]  ;;  %882 = vset.pattern.permute.xlu1 %v1028_v31  ;;  %883 = vset.pattern.permute.xlu0 %v1028_v31  ;;  %v468_v34 = vld [vmem:[#allocation5 + $0x1f0] sm:$0xff]  ;;  %v434_v35 = vld [vmem:[#allocation5 + $0xe0] sm:$0xff]  ;;  %s818_s19 = sshll.u32 %s1090_s28, 3  ;;  %s286_s12 = scalar_lea.vmem [#allocation7], %s808_s7 }
  0x31   : > { %v321_v27 = vld [vmem:[%s1244_s3] sm:$0xf]  ;;  %534 = vmatpush.msra.mxu0 %v436_v33  ;;  %554 = vmatpush.msra.mxu1 %v468_v34  ;;  %v466_v37 = vld [vmem:[#allocation5 + $0x1e0] sm:$0xff]  ;;  %v432_v39 = vld [vmem:[#allocation5 + $0xd0] sm:$0xff]  ;;  %s715_s20 = scalar_lea.hbm %s1247_s6, %s818_s19  ;;  %s717_s29 = sshll.u32 %s286_s12, 4  ;;  %s718_s29 = int_to_ptr.vmem [resolvable:$true] %s717_s29 }
  0x32   : > { %v327_v32 = vld [vmem:[%s1245_s4] sm:$0xf]  ;;  %v464_v40 = vld [vmem:[#allocation5 + $0x1d0] sm:$0xff]  ;;  %v430_v41 = vld [vmem:[#allocation5 + $0xc0] sm:$0xff]  ;;  %s719_s15 = sshll.u32 %s715_s20, 4  ;;  %s704_s28 = scalar_lea.sflag [#allocation4], %s1157_s17  ;;  %s720_s15 = int_to_ptr.hbm [resolvable:$true] %s719_s15 }
  0x33   : > { %535 = vmatpush.msra.mxu0 %v434_v35  ;;  %555 = vmatpush.msra.mxu1 %v466_v37  ;;  %v462_v43 = vld [vmem:[#allocation5 + $0x1c0] sm:$0xff]  ;;  %v500_v44 = vld [vmem:[#allocation5 + $0x2f0] sm:$0xff]  ;;  %s966_s30 = sshra.s32 %s720_s15, 4  ;;  %s972_s7 = scalar_lea.hbm %s1247_s6, 16  ;;  %s967_s30 = int_to_ptr.hbm [resolvable:$true] %s966_s30 }
  0x34   : > { %v532_v45 = vld [vmem:[#allocation5 + $0x3f0] sm:$0xff]  ;;  %v498_v46 = vld [vmem:[#allocation5 + $0x2e0] sm:$0xff]  ;;  %574 = vmatpush.msra.mxu2 %v500_v44  ;;  %v467_v44 = vld [vmem:[#allocation5 + $0x1e8] sm:$0xff]  ;;  %s968_s8 = scalar_lea.hbm %s967_s30, 8  ;;  %p973_p12 = scmp.lt.s32.totalorder %s967_s30, %s1247_s6 }
  0x35   : > { %v885_v7 = vpop.eup %884  ;;  %536 = vmatpush.msra.mxu0 %v432_v39  ;;  %556 = vmatpush.msra.mxu1 %v464_v40  ;;  %v530_v47 = vld [vmem:[#allocation5 + $0x3e0] sm:$0xff]  ;;  %v428_v48 = vld [vmem:[#allocation5 + $0xb0] sm:$0xff]  ;;  %v437_v39 = vld [vmem:[#allocation5 + $0xf8] sm:$0xff]  ;;  %p969_p1 = scmp.ne.s32.totalorder %s967_s30, %s968_s8  ;;  %p974_p8 = scmp.lt.s32.totalorder %s972_s7, %s968_s8 }
  0x36   : > { %v290_v1 = vld.sshfl [vmem:[#allocation1] sm:$0xff pattern:$0x75316420]  ;;  %v291_v2 = vld.sshfl [vmem:[#allocation1 + $0x8] sm:$0xff pattern:$0x75316420]  ;;  %vm305_vm1 = vweird.f32 %v885_v7  ;;  %594 = vmatpush.msra.mxu3 %v532_v45  ;;  %575 = vmatpush.msra.mxu2 %v498_v46 }
  0x37   : > { %v295_v3 = vsel %vm294_vm0, %v290_v1, 0.0  ;;  %v296_v4 = vsel %vm294_vm0, %v291_v2, 0.0  ;;  %v301_v8 = vmul.f32 256.0, %v885_v7  ;;  %v460_v49 = vld [vmem:[#allocation5 + $0x1b0] sm:$0xff]  ;;  %537 = vmatpush.msra.mxu0 %v430_v41  ;;  %557 = vmatpush.msra.mxu1 %v462_v43  ;;  %v426_v52 = vld [vmem:[#allocation5 + $0xa0] sm:$0xff]  ;;  %v469_v40 = vld [vmem:[#allocation5 + $0x1f8] sm:$0xff]  ;;  %p970_p3 = pnand %p969_p1, %p1126_p13  ;;  %p975_p7 = por %p974_p8, %p973_p12 }
  0x38   : > { %v297_v5 = vadd.f32 %v296_v4, %v295_v3  ;;  %v496_v50 = vld [vmem:[#allocation5 + $0x2d0] sm:$0xff]  ;;  %v458_v53 = vld [vmem:[#allocation5 + $0x1a0] sm:$0xff]  ;;  %595 = vmatpush.msra.mxu3 %v530_v47  ;;  %v435_v43 = vld [vmem:[#allocation5 + $0xe8] sm:$0xff] }
  0x39   : > { %v302_v9 = vsub.f32 1.0, %v301_v8  ;;  %v528_v51 = vld [vmem:[#allocation5 + $0x3d0] sm:$0xff]  ;;  %538 = vmatpush.msra.mxu0 %v428_v48  ;;  %558 = vmatpush.msra.mxu1 %v460_v49  ;;  %v494_v54 = vld [vmem:[#allocation5 + $0x2c0] sm:$0xff]  ;;  %v433_v47 = vld [vmem:[#allocation5 + $0xd8] sm:$0xff]  ;;  %p971_p5 = pneg %p970_p3 }
  0x3a   : > { %298 = vadd.xlane.f32.xlu0 %v297_v5  ;;  %v526_v55 = vld [vmem:[#allocation5 + $0x3c0] sm:$0xff]  ;;  %v424_v56 = vld [vmem:[#allocation5 + $0x90] sm:$0xff]  ;;  %576 = vmatpush.msra.mxu2 %v496_v50  ;;  %v465_v48 = vld [vmem:[#allocation5 + $0x1d8] sm:$0xff] }
  0x3b   : > { %v303_v10 = vmul.f32 %v885_v7, %v302_v9  ;;  %v456_v57 = vld [vmem:[#allocation5 + $0x190] sm:$0xff]  ;;  %596 = vmatpush.msra.mxu3 %v528_v51  ;;  %539 = vmatpush.msra.mxu0 %v426_v52  ;;  %v422_v61 = vld [vmem:[#allocation5 + $0x80] sm:$0xff]  ;;  %v431_v51 = vld [vmem:[#allocation5 + $0xc8] sm:$0xff]  ;;  %p976_p9 = pnand %p975_p7, %p971_p5 }
  0x3c   : > { %559 = vmatpush.msra.mxu1 %v458_v53  ;;  %v492_v58 = vld [vmem:[#allocation5 + $0x2b0] sm:$0xff]  ;;  %v454_v62 = vld [vmem:[#allocation5 + $0x180] sm:$0xff]  ;;  %577 = vmatpush.msra.mxu2 %v494_v54  ;;  %v463_v52 = vld [vmem:[#allocation5 + $0x1c8] sm:$0xff] }
  0x3d   : > { %v304_v11 = vadd.f32 %v885_v7, %v303_v10  ;;  %v524_v59 = vld [vmem:[#allocation5 + $0x3b0] sm:$0xff]  ;;  %597 = vmatpush.msra.mxu3 %v526_v55  ;;  %540 = vmatpush.msra.mxu0 %v424_v56  ;;  %v490_v1 = vld [vmem:[#allocation5 + $0x2a0] sm:$0xff]  ;;  %v429_v55 = vld [vmem:[#allocation5 + $0xb8] sm:$0xff] }
  0x3e   : > { %560 = vmatpush.msra.mxu1 %v456_v57  ;;  %v522_v2 = vld [vmem:[#allocation5 + $0x3a0] sm:$0xff]  ;;  %v420_v3 = vld [vmem:[#allocation5 + $0x70] sm:$0xff]  ;;  %578 = vmatpush.msra.mxu2 %v492_v58  ;;  %v461_v56 = vld [vmem:[#allocation5 + $0x1b8] sm:$0xff] }
  0x3f   : > { %v306_v12 = vsel %vm305_vm1, %v885_v7, %v304_v11  ;;  %v452_v4 = vld [vmem:[#allocation5 + $0x170] sm:$0xff]  ;;  %598 = vmatpush.msra.mxu3 %v524_v59  ;;  %541 = vmatpush.msra.mxu0 %v422_v61  ;;  %v418_v7 = vld [vmem:[#allocation5 + $0x60] sm:$0xff]  ;;  %v427_v59 = vld [vmem:[#allocation5 + $0xa8] sm:$0xff] }
  0x40   : > { %561 = vmatpush.msra.mxu1 %v454_v62  ;;  %v488_v5 = vld [vmem:[#allocation5 + $0x290] sm:$0xff]  ;;  %v450_v8 = vld [vmem:[#allocation5 + $0x160] sm:$0xff]  ;;  %579 = vmatpush.msra.mxu2 %v490_v1  ;;  %v501_v61 = vld [vmem:[#allocation5 + $0x2f8] sm:$0xff] }
  0x41   : > { %v520_v6 = vld [vmem:[#allocation5 + $0x390] sm:$0xff]  ;;  %599 = vmatpush.msra.mxu3 %v522_v2  ;;  %542 = vmatpush.msra.mxu0 %v420_v3  ;;  %v486_v9 = vld [vmem:[#allocation5 + $0x280] sm:$0xff]  ;;  %v533_v62 = vld [vmem:[#allocation5 + $0x3f8] sm:$0xff] }
  0x42   : > { %562 = vmatpush.msra.mxu1 %v452_v4  ;;  %v518_v10 = vld [vmem:[#allocation5 + $0x380] sm:$0xff]  ;;  %v416_v11 = vld [vmem:[#allocation5 + $0x50] sm:$0xff]  ;;  %580 = vmatpush.msra.mxu2 %v488_v5  ;;  %v457_v1 = vld [vmem:[#allocation5 + $0x198] sm:$0xff] }
  0x43   : > { %600 = vmatpush.msra.mxu3 %v520_v6  ;;  %543 = vmatpush.msra.mxu0 %v418_v7  ;;  %v406_v35 = vld [vmem:[#allocation5] sm:$0xff]  ;;  %v480_v37 = vld [vmem:[#allocation5 + $0x250] sm:$0xff]  ;;  %v499_v2 = vld [vmem:[#allocation5 + $0x2e8] sm:$0xff] }
  0x44   : > { %563 = vmatpush.msra.mxu1 %v450_v8  ;;  %581 = vmatpush.msra.mxu2 %v486_v9  ;;  %v478_v41 = vld [vmem:[#allocation5 + $0x240] sm:$0xff]  ;;  %v476_v45 = vld [vmem:[#allocation5 + $0x230] sm:$0xff]  ;;  %v531_v3 = vld [vmem:[#allocation5 + $0x3e8] sm:$0xff] }
  0x45   : > { %601 = vmatpush.msra.mxu3 %v518_v10  ;;  %544 = vmatpush.msra.mxu0 %v416_v11  ;;  %v508_v46 = vld [vmem:[#allocation5 + $0x330] sm:$0xff]  ;;  %v474_v49 = vld [vmem:[#allocation5 + $0x220] sm:$0xff]  ;;  %v423_v4 = vld [vmem:[#allocation5 + $0x88] sm:$0xff] }
  0x46   : > { %v506_v50 = vld [vmem:[#allocation5 + $0x320] sm:$0xff]  ;;  %v472_v53 = vld [vmem:[#allocation5 + $0x210] sm:$0xff]  ;;  %v455_v5 = vld [vmem:[#allocation5 + $0x188] sm:$0xff] }
  0x47   : > { %v504_v54 = vld [vmem:[#allocation5 + $0x310] sm:$0xff]  ;;  %v470_v57 = vld [vmem:[#allocation5 + $0x200] sm:$0xff]  ;;  %v497_v6 = vld [vmem:[#allocation5 + $0x2d8] sm:$0xff] }
  0x48   : > { %v502_v58 = vld [vmem:[#allocation5 + $0x300] sm:$0xff]  ;;  %v529_v7 = vld [vmem:[#allocation5 + $0x3d8] sm:$0xff]  ;;  %v495_v10 = vld [vmem:[#allocation5 + $0x2c8] sm:$0xff] }
  0x49   : > { %v421_v8 = vld [vmem:[#allocation5 + $0x78] sm:$0xff]  ;;  %v527_v11 = vld [vmem:[#allocation5 + $0x3c8] sm:$0xff] }
  0x4a   : > { %v453_v9 = vld [vmem:[#allocation5 + $0x178] sm:$0xff] }
  0xad   : > { %v299_v14 = vpop.xlane.xlu0 %298 }
  0xae   : > { %v307_v15 = vmul.f32 %v306_v12, %v299_v14  ;;  %v448_v12 = vld [vmem:[#allocation5 + $0x150] sm:$0xff] }
  0xaf   : > { %v516_v14 = vld [vmem:[#allocation5 + $0x370] sm:$0xff]  ;;  %564 = vmatpush.msra.mxu1 %v448_v12  ;;  %v419_v12 = vld [vmem:[#allocation5 + $0x68] sm:$0xff] }
  0xb0   : > { %v309_v16 = vmul.f32 %v308_v13, %v307_v15  ;;  %v484_v13 = vld [vmem:[#allocation5 + $0x270] sm:$0xff]  ;;  %v414_v15 = vld [vmem:[#allocation5 + $0x40] sm:$0xff]  ;;  %602 = vmatpush.msra.mxu3 %v516_v14  ;;  %v493_v14 = vld [vmem:[#allocation5 + $0x2b8] sm:$0xff] }
  0xb1   : > { %582 = vmatpush.msra.mxu2 %v484_v13  ;;  %545 = vmatpush.msra.mxu0 %v414_v15  ;;  %v451_v13 = vld [vmem:[#allocation5 + $0x168] sm:$0xff]  ;;  %v525_v15 = vld [vmem:[#allocation5 + $0x3b8] sm:$0xff] }
  0xb2   : > { %v311_v17 = vsel %vm310_vm2, %v309_v16, 0.0  ;;  %v446_v16 = vld [vmem:[#allocation5 + $0x140] sm:$0xff] }
  0xb3   : > { %v312_v18 = vrot.slane %v311_v17, 4  ;;  %565 = vmatpush.msra.mxu1 %v446_v16  ;;  %v417_v16 = vld [vmem:[#allocation5 + $0x58] sm:$0xff] }
  0xb5   : > { %v313_v19 = vadd.f32 %v312_v18, %v311_v17  ;;  %v482_v18 = vld [vmem:[#allocation5 + $0x260] sm:$0xff] }
  0xb6   : > { %583 = vmatpush.msra.mxu2 %v482_v18  ;;  %v491_v18 = vld [vmem:[#allocation5 + $0x2a8] sm:$0xff] }
  0xb7   : > { %v314_v20 = vrot.slane %v313_v19, 2 }
  0xb8   : > { %584 = vmatpush.msra.mxu2 %v480_v37  ;;  %v483_v37 = vld [vmem:[#allocation5 + $0x268] sm:$0xff] }
  0xb9   : > { %v315_v21 = vadd.f32 %v314_v20, %v313_v19  ;;  %v514_v19 = vld [vmem:[#allocation5 + $0x360] sm:$0xff] }
  0xba   : > { %603 = vmatpush.msra.mxu3 %v514_v19  ;;  %585 = vmatpush.msra.mxu2 %v478_v41  ;;  %v523_v19 = vld [vmem:[#allocation5 + $0x3a8] sm:$0xff] }
  0xbb   : > { %v316_v22 = vrot.slane %v315_v21, 1 }
  0xbc   : > { %586 = vmatpush.msra.mxu2 %v476_v45  ;;  %v479_v45 = vld [vmem:[#allocation5 + $0x248] sm:$0xff] }
  0xbd   : > { %v317_v24 = vadd.f32 %v316_v22, %v315_v21  ;;  %v412_v21 = vld [vmem:[#allocation5 + $0x30] sm:$0xff] }
  0xbe   : > { %v444_v22 = vld [vmem:[#allocation5 + $0x130] sm:$0xff]  ;;  %546 = vmatpush.msra.mxu0 %v412_v21  ;;  %587 = vmatpush.msra.mxu2 %v474_v49  ;;  %v447_v21 = vld [vmem:[#allocation5 + $0x148] sm:$0xff]  ;;  %v509_v49 = vld [vmem:[#allocation5 + $0x338] sm:$0xff] }
  0xbf   : > { %v319_v25 = vadd.f32 %v318_v23, %v317_v24  ;;  %v410_v24 = vld [vmem:[#allocation5 + $0x20] sm:$0xff]  ;;  %566 = vmatpush.msra.mxu1 %v444_v22  ;;  %v489_v22 = vld [vmem:[#allocation5 + $0x298] sm:$0xff] }
  0xc0   : > { %547 = vmatpush.msra.mxu0 %v410_v24  ;;  %588 = vmatpush.msra.mxu2 %v472_v53  ;;  %v1029_v24 = vmov 839922192   ;;  %v473_v53 = vld [vmem:[#allocation5 + $0x218] sm:$0xff] }
  0xc1   : > { %v320_v26 = vmax.f32 %v319_v25, 0.0  ;;  %v442_v25 = vld [vmem:[#allocation5 + $0x120] sm:$0xff] }
  0xc2   : > { %567 = vmatpush.msra.mxu1 %v442_v25  ;;  %589 = vmatpush.msra.mxu2 %v470_v57  ;;  %v353_v25 = vunpack.c.l.s4 %v1029_v24 }
  0xc3   : > { %v322_v28 = vperm.slane %v320_v26, 0 }
  0xc4   : > { %654 = vmatpush.msrb.mxu2 %v501_v61 }
  0xc5   : > { %v323_v29 = vmul.f32 %v322_v28, %v321_v27 }
  0xc6   : > { %655 = vmatpush.msrb.mxu2 %v499_v2 }
  0xc7   : > { %v324_v30 = vsel %vm310_vm2, %v323_v29, 0.0  ;;  %v408_v29 = vld [vmem:[#allocation5 + $0x10] sm:$0xff] }
  0xc8   : > { %325 = vadd.xlane.f32.xlu0 %v324_v30  ;;  %v440_v30 = vld [vmem:[#allocation5 + $0x110] sm:$0xff]  ;;  %548 = vmatpush.msra.mxu0 %v408_v29  ;;  %v519_v29 = vld [vmem:[#allocation5 + $0x388] sm:$0xff] }
  0xc9   : > { %568 = vmatpush.msra.mxu1 %v440_v30  ;;  %656 = vmatpush.msrb.mxu2 %v497_v6  ;;  %v411_v30 = vld [vmem:[#allocation5 + $0x28] sm:$0xff] }
  0xca   : > { %549 = vmatpush.msra.mxu0 %v406_v35  ;;  %v409_v35 = vld [vmem:[#allocation5 + $0x18] sm:$0xff] }
  0xcb   : > { %657 = vmatpush.msrb.mxu2 %v495_v10 }
  0xcc   : > { %614 = vmatpush.msrb.mxu0 %v437_v39  ;;  %v407_v39 = vld [vmem:[#allocation5 + $0x8] sm:$0xff] }
  0xcd   : > { %658 = vmatpush.msrb.mxu2 %v493_v14 }
  0xce   : > { %615 = vmatpush.msrb.mxu0 %v435_v43  ;;  %v513_v43 = vld [vmem:[#allocation5 + $0x358] sm:$0xff] }
  0xcf   : > { %659 = vmatpush.msrb.mxu2 %v491_v18 }
  0xd0   : > { %616 = vmatpush.msrb.mxu0 %v433_v47 }
  0xd1   : > { %660 = vmatpush.msrb.mxu2 %v489_v22 }
  0xd2   : > { %617 = vmatpush.msrb.mxu0 %v431_v51  ;;  %v475_v51 = vld [vmem:[#allocation5 + $0x228] sm:$0xff] }
  0xd4   : > { %618 = vmatpush.msrb.mxu0 %v429_v55  ;;  %v503_v55 = vld [vmem:[#allocation5 + $0x308] sm:$0xff] }
  0xd6   : > { %619 = vmatpush.msrb.mxu0 %v427_v59 }
 0x13b   : > { %v326_v36 = vpop.xlane.xlu0 %325 }
 0x13c   : > { %v328_v38 = vadd.f32 %v327_v32, %v326_v36  ;;  %v438_v36 = vld [vmem:[#allocation5 + $0x100] sm:$0xff] }
 0x13d   : > { %569 = vmatpush.msra.mxu1 %v438_v36  ;;  %v441_v36 = vld [vmem:[#allocation5 + $0x118] sm:$0xff] }
 0x13e   : > { %v811_v42 = vmul.f32 -1.442695, %v328_v38  ;;  %v512_v38 = vld [vmem:[#allocation5 + $0x350] sm:$0xff] }
 0x13f   : > { %604 = vmatpush.msra.mxu3 %v512_v38  ;;  %634 = vmatpush.msrb.mxu1 %v469_v40  ;;  %v515_v38 = vld [vmem:[#allocation5 + $0x368] sm:$0xff] }
 0x140   : > { %886 = vpow2.f32 %v811_v42  ;;  %v510_v42 = vld [vmem:[#allocation5 + $0x340] sm:$0xff]  ;;  %v439_v40 = vld [vmem:[#allocation5 + $0x108] sm:$0xff] }
 0x141   : > { %605 = vmatpush.msra.mxu3 %v510_v42  ;;  %635 = vmatpush.msrb.mxu1 %v467_v44  ;;  %v481_v42 = vld [vmem:[#allocation5 + $0x258] sm:$0xff] }
 0x143   : > { %606 = vmatpush.msra.mxu3 %v508_v46  ;;  %636 = vmatpush.msrb.mxu1 %v465_v48  ;;  %v511_v46 = vld [vmem:[#allocation5 + $0x348] sm:$0xff]  ;;  %v477_v48 = vld [vmem:[#allocation5 + $0x238] sm:$0xff] }
 0x145   : > { %607 = vmatpush.msra.mxu3 %v506_v50  ;;  %637 = vmatpush.msrb.mxu1 %v463_v52  ;;  %v1030_v50 = vmov 4.0   ;;  %v507_v52 = vld [vmem:[#allocation5 + $0x328] sm:$0xff] }
 0x146   : > { %v887_v60 = vpop.eup %886 }
 0x147   : > { %v1188_v63 = vadd.f32 1.0, %v887_v60  ;;  %608 = vmatpush.msra.mxu3 %v504_v54  ;;  %v459_v60 = vld [vmem:[#allocation5 + $0x1a8] sm:$0xff]  ;;  %638 = vmatpush.msrb.mxu1 %v461_v56  ;;  %v505_v54 = vld [vmem:[#allocation5 + $0x318] sm:$0xff] }
 0x149   : > { %888 = vrcp.f32 %v1188_v63  ;;  %v344_v26 = vand.u32 2147483648, %v1188_v63  ;;  %v342_v28 = vand.u32 2147483647, %v1188_v63  ;;  %vm338_vm4 = vweird.f32 %v1188_v63  ;;  %609 = vmatpush.msra.mxu3 %v502_v58  ;;  %639 = vmatpush.msrb.mxu1 %v459_v60 }
 0x14a   : > { %890 = vrcp.f32 %v1030_v50 }
 0x14b   : > { %v345_v32 = vor.u32 1.1754944e-38, %v344_v26  ;;  %vm343_vm6 = vcmp.eq.f32.partialorder %v342_v28, 8.507059e+37  ;;  %674 = vmatpush.msrb.mxu3 %v533_v62  ;;  %640 = vmatpush.msrb.mxu1 %v457_v1  ;;  %v413_v26 = vld [vmem:[#allocation5 + $0x38] sm:$0xff]  ;;  %v487_v28 = vld [vmem:[#allocation5 + $0x288] sm:$0xff] }
 0x14c   : > { %661 = vmatpush.msrb.mxu2 %v487_v28 }
 0x14d   : > { %675 = vmatpush.msrb.mxu3 %v531_v3  ;;  %641 = vmatpush.msrb.mxu1 %v455_v5 }
 0x14f   : > { %v889_v17 = vpop.eup %888  ;;  %676 = vmatpush.msrb.mxu3 %v529_v7  ;;  %642 = vmatpush.msrb.mxu1 %v453_v9 }
 0x150   : > { %v334_v20 = vmul.f32 %v889_v17, %v1188_v63  ;;  %vm339_vm3 = vweird.f32 %v889_v17  ;;  %v425_v63 = vld [vmem:[#allocation5 + $0x98] sm:$0xff]  ;;  %v891_v56 = vpop.eup %890 }
 0x151   : > { %vm340_vm5 = vmor %vm338_vm4, %vm339_vm3  ;;  %620 = vmatpush.msrb.mxu0 %v425_v63  ;;  %677 = vmatpush.msrb.mxu3 %v527_v11  ;;  %v398_v63 = vmul.f32 4.0, %v891_v56  ;;  %vm402_vm7 = vweird.f32 %v891_v56 }
 0x152   : > { %v335_v23 = vsub.f32 1.0, %v334_v20  ;;  %643 = vmatpush.msrb.mxu1 %v451_v13  ;;  %v415_v20 = vld [vmem:[#allocation5 + $0x48] sm:$0xff] }
 0x153   : > { %621 = vmatpush.msrb.mxu0 %v423_v4  ;;  %678 = vmatpush.msrb.mxu3 %v525_v15  ;;  %v399_v5 = vsub.f32 1.0, %v398_v63 }
 0x154   : > { %v336_v27 = vmul.f32 %v889_v17, %v335_v23  ;;  %v521_v23 = vld [vmem:[#allocation5 + $0x398] sm:$0xff] }
 0x155   : > { %622 = vmatpush.msrb.mxu0 %v421_v8  ;;  %679 = vmatpush.msrb.mxu3 %v523_v19 }
 0x156   : > { %v337_v31 = vadd.f32 %v889_v17, %v336_v27  ;;  %v445_v27 = vld [vmem:[#allocation5 + $0x138] sm:$0xff] }
 0x157   : > { %623 = vmatpush.msrb.mxu0 %v419_v12  ;;  %680 = vmatpush.msrb.mxu3 %v521_v23 }
 0x158   : > { %v341_v33 = vsel %vm340_vm5, %v889_v17, %v337_v31  ;;  %v449_v17 = vld [vmem:[#allocation5 + $0x158] sm:$0xff]  ;;  %v443_v31 = vld [vmem:[#allocation5 + $0x128] sm:$0xff] }
 0x159   : > { %v346_v34 = vsel %vm343_vm6, %v345_v32, %v341_v33  ;;  %624 = vmatpush.msrb.mxu0 %v417_v16  ;;  %644 = vmatpush.msrb.mxu1 %v449_v17  ;;  %v485_v32 = vld [vmem:[#allocation5 + $0x278] sm:$0xff]  ;;  %v400_v16 = vmul.f32 %v891_v56, %v399_v5 }
 0x15a   : > { %350 = vperm.xlu1 %882, %v346_v34   ;;  %v517_v33 = vld [vmem:[#allocation5 + $0x378] sm:$0xff]  ;;  %v354_v34 = vunpack.c.0.s8 %v353_v25  ;;  %681 = vmatpush.msrb.mxu3 %v519_v29 }
 0x15b   : > { %625 = vmatpush.msrb.mxu0 %v415_v20  ;;  %645 = vmatpush.msrb.mxu1 %v447_v21  ;;  %v401_v23 = vadd.f32 %v891_v56, %v400_v16 }
 0x15c   : > { %662 = vmatpush.msrb.mxu2 %v485_v32  ;;  %682 = vmatpush.msrb.mxu3 %v517_v33 }
 0x15d   : > { %626 = vmatpush.msrb.mxu0 %v413_v26  ;;  %646 = vmatpush.msrb.mxu1 %v445_v27  ;;  %v403_v28 = vsel %vm402_vm7, %v891_v56, %v401_v23 }
 0x15e   : > { %663 = vmatpush.msrb.mxu2 %v483_v37  ;;  %683 = vmatpush.msrb.mxu3 %v515_v38 }
 0x15f   : > { %627 = vmatpush.msrb.mxu0 %v411_v30  ;;  %647 = vmatpush.msrb.mxu1 %v443_v31 }
 0x160   : > { %664 = vmatpush.msrb.mxu2 %v481_v42  ;;  %684 = vmatpush.msrb.mxu3 %v513_v43 }
 0x161   : > { %628 = vmatpush.msrb.mxu0 %v409_v35  ;;  %648 = vmatpush.msrb.mxu1 %v441_v36 }
 0x162   : > { %665 = vmatpush.msrb.mxu2 %v479_v45  ;;  %685 = vmatpush.msrb.mxu3 %v511_v46 }
 0x163   : > { %629 = vmatpush.msrb.mxu0 %v407_v39  ;;  %649 = vmatpush.msrb.mxu1 %v439_v40 }
 0x164   : > { %666 = vmatpush.msrb.mxu2 %v477_v48  ;;  %686 = vmatpush.msrb.mxu3 %v509_v49 }
 0x166   : > { %667 = vmatpush.msrb.mxu2 %v475_v51  ;;  %687 = vmatpush.msrb.mxu3 %v507_v52 }
 0x168   : > { %668 = vmatpush.msrb.mxu2 %v473_v53  ;;  %688 = vmatpush.msrb.mxu3 %v505_v54 }
 0x16a   : > { %689 = vmatpush.msrb.mxu3 %v503_v55 }
 0x1cc   : > { %v351_v41 = vpop.permute.xlu1 %350 }
 0x1cd   : > { %v355_v44 = vperm.slane %v351_v41, %v354_v34 }
 0x1cf   : > { %v1196_v47 = vmul.f32 %v355_v44, %v1171_v0  ;;  %v471_v0 = vld [vmem:[#allocation5 + $0x208] sm:$0xff] }
 0x1d0   : > { %669 = vmatpush.msrb.mxu2 %v471_v0 }
 0x1d1   : > { %359 = vst [vmem:[#allocation1] ss:$2 sm:$0xff] %v1196_v47 }
 0x1d8   : > { %v360_v57 = vld.sshfl [vmem:[#allocation1] sm:$0xff pattern:$0x75316420]  ;;  %v361_v58 = vld.sshfl [vmem:[#allocation1 + $0x8] sm:$0xff pattern:$0x75316420] }
 0x1d9   : > { %v364_v59 = vsel %vm294_vm0, %v360_v57, -inf  ;;  %v371_v60 = vsel %vm294_vm0, %v361_v58, -inf  ;;  %378 = vst [vmem:[#allocation1] ss:$2 sm:$0xff] %v1196_v47 }
 0x1da   : > { %v365_v61 = vrot.slane %v364_v59, 4  ;;  %v372_v62 = vrot.slane %v371_v60, 4 }
 0x1dc   : > { %v366_v1 = vmax.f32 %v364_v59, %v365_v61  ;;  %v373_v2 = vmax.f32 %v371_v60, %v372_v62 }
 0x1de   : > { %v367_v3 = vrot.slane %v366_v1, 2  ;;  %v374_v4 = vrot.slane %v373_v2, 2 }
 0x1e0   : > { %v368_v6 = vmax.f32 %v366_v1, %v367_v3  ;;  %v375_v7 = vmax.f32 %v373_v2, %v374_v4  ;;  %v379_v8 = vld.sshfl [vmem:[#allocation1] sm:$0xff pattern:$0x75316420]  ;;  %v380_v9 = vld.sshfl [vmem:[#allocation1 + $0x8] sm:$0xff pattern:$0x75316420] }
 0x1e1   : > { %v383_v10 = vsel %vm294_vm0, %v379_v8, 0.0  ;;  %v390_v11 = vsel %vm294_vm0, %v380_v9, 0.0 }
 0x1e2   : > { %v369_v12 = vrot.slane %v368_v6, 1  ;;  %v376_v13 = vrot.slane %v375_v7, 1  ;;  %v384_v14 = vrot.slane %v383_v10, 4  ;;  %v391_v15 = vrot.slane %v390_v11, 4 }
 0x1e4   : > { %v370_v17 = vmax.f32 %v368_v6, %v369_v12  ;;  %v377_v18 = vmax.f32 %v375_v7, %v376_v13  ;;  %v385_v19 = vadd.f32 %v384_v14, %v383_v10  ;;  %v392_v20 = vadd.f32 %v391_v15, %v390_v11 }
 0x1e6   : > { %550 = vmatmul.f32.vlgmr.msra.gmra.mxu0 %v370_v17  ;;  %570 = vmatmul.f32.vlgmr.msra.gmra.mxu1 %v377_v18  ;;  %v386_v21 = vrot.slane %v385_v19, 2  ;;  %v393_v22 = vrot.slane %v392_v20, 2 }
 0x1e8   : > { %v387_v24 = vadd.f32 %v386_v21, %v385_v19  ;;  %v394_v25 = vadd.f32 %v393_v22, %v392_v20 }
 0x1ea   : > { %v388_v26 = vrot.slane %v387_v24, 1  ;;  %v395_v27 = vrot.slane %v394_v25, 1 }
 0x1ec   : > { %v389_v29 = vadd.f32 %v388_v26, %v387_v24  ;;  %v396_v30 = vadd.f32 %v395_v27, %v394_v25 }
 0x1ee   : > { %630 = vmatmul.f32.vlgmr.msrb.gmra.mxu0 %v370_v17  ;;  %650 = vmatmul.f32.vlgmr.msrb.gmra.mxu1 %v377_v18  ;;  %v404_v31 = vmul.f32 %v403_v28, %v389_v29  ;;  %v405_v32 = vmul.f32 %v403_v28, %v396_v30 }
 0x1f0   : > { %590 = vmatmul.f32.vlgmr.msra.gmra.mxu2 %v404_v31  ;;  %610 = vmatmul.f32.vlgmr.msra.gmra.mxu3 %v405_v32 }
 0x1f8   : > { %670 = vmatmul.f32.vlgmr.msrb.gmra.mxu2 %v404_v31  ;;  %690 = vmatmul.f32.vlgmr.msrb.gmra.mxu3 %v405_v32 }
 0x263   : > { %v551_v33 = vpop.f32.mrf.mxu0  ;;  %v571_v34 = vpop.f32.mrf.mxu1 }
 0x264   : > { %v572_v39 = vadd.f32 %v571_v34, %v551_v33 }
 0x26b   : > { %v631_v37 = vpop.f32.mrf.mxu0  ;;  %v651_v38 = vpop.f32.mrf.mxu1 }
 0x26c   : > { %v652_v40 = vadd.f32 %v651_v38, %v631_v37 }
 0x273   : > { %v591_v35 = vpop.f32.mrf.mxu2  ;;  %v611_v36 = vpop.f32.mrf.mxu3 }
 0x274   : > { %v592_v41 = vadd.f32 %v591_v35, %v572_v39 }
 0x276   : > { %v612_v45 = vadd.f32 %v611_v36, %v592_v41 }
 0x278   : > { %v694_v49 = vperm.slane %v612_v45, 0 }
 0x27b   : > { %v671_v42 = vpop.f32.mrf.mxu2  ;;  %v691_v44 = vpop.f32.mrf.mxu3 }
 0x27c   : > { %v672_v43 = vadd.f32 %v671_v42, %v652_v40 }
 0x27e   : > { %v692_v46 = vadd.f32 %v691_v44, %v672_v43 }
 0x280   : > { %v695_v48 = vperm.slane %v692_v46, 0 }
 0x282   : > { %v698_v50 = vrot.slane %v695_v48, 4 }
 0x284   : > { %v699_v51 = vsel %vm294_vm0, %v694_v49, %v698_v50 }
 0x285   : > { %v701_v52 = vmul.f32 %v699_v51, %v1196_v47 }
 0x287   : > { %702 = vst [vmem:[%s286_s12] sm:$0xff] %v701_v52 }
 0x288   : > { %979 = shalt.err (!%p976_p9)
}
 0x289   : > { %825 = dma.vmem_to_hbm [thread:$0]  (%p1126_p13), %s718_s29, 128, %s720_s15, %s704_s28  }
 0x28a PF: > { %s731_s17 = sand.u32 1, %s1010_s21   ;;  %p1253_p10 = scmp.ge.s32.totalorder %s1022_s24, 2 }
 0x28b   : > { %s732_s19 = scalar_lea.sflag [#allocation4], %s731_s17 }
 0x28c   : > { %p836_p11 = pnand %p1253_p10, %p1131_p4 }
 0x28e   : > { %p837_p0 = pneg %p836_p11 }
 0x290   : > { %1005 = dma.done.wait (%p837_p0), %s732_s19, 128  }
 0x291   : > { %1007 = vsyncadd (%p837_p0), %s732_s19, 4294967168  ;;  %p20_p2 = scmp.ge.s32.totalorder %s1106_s11, 4   ;;  %s1254_s21 = smov %s1014_s22 }
 0x292   : > { %s1255_s22 = smov %s1018_s23  ;;  %s1256_s23 = smov %s1118_s14 }
 0x293   : > { %s1257_s24 = smov %s1106_s11  ;;  %22 = sbr.rel (!%p20_p2) target bundleno = 6 (0x6), region = 93 }
 0x298   :  { %738 = vsyncpa [#allocation3], 1 }
 0x299   :  { %740 = vsyncpa [#allocation3 + $0x1], 1 }
 0x29a   :  { %741 = vsyncpa [#allocation6], 1 }
 0x29b   :  { %742 = vsyncpa [#allocation4], 1 }
 0x29c   :  { %744 = vsyncpa [#allocation4 + $0x1], 1 }

</bundles_post_ra>
